<compile_context>
chip_gen: v7x
topology: tpu7x:2x2x1
jax: 0.10.0
libtpu: 0.0.40
codegen_flags: <defaults>
</compile_context>

<pallas_src>
import jax
import jax.numpy as jnp
from jax.experimental import pallas as pl
from jax.experimental.pallas import tpu as pltpu


# Above this latent size, switch to the K-tiled accumulator path so K-resident
# tiles never blow the scoped VMEM budget.
_K_SPLIT = 1024


def _round_up(x, m):
    return ((x + m - 1) // m) * m


def _pick_tile(padded, unit, max_tile):
    """Largest multiple of `unit` that divides `padded` and is <= max_tile."""
    best = unit
    d = unit
    while d <= min(padded, max_tile):
        if padded % d == 0:
            best = d
        d += unit
    return best


# ----------------------------- kernels ---------------------------------------

def _linear_kernel(z_ref, w_ref, b_ref, o_ref):
    # Single MXU pass per (tm, tn) tile; f32 accumulate, bias add on the VPU.
    acc = jnp.dot(z_ref[...], w_ref[...], preferred_element_type=jnp.float32)
    o_ref[...] = (acc + b_ref[...].astype(jnp.float32)).astype(o_ref.dtype)


def _linear_kernel_ktiled(z_ref, w_ref, b_ref, o_ref, acc_ref):
    # K tiled along the innermost ("arbitrary") grid axis; f32 VMEM accumulator.
    k = pl.program_id(2)

    @pl.when(k == 0)
    def _():
        acc_ref[...] = jnp.zeros_like(acc_ref)

    acc_ref[...] += jnp.dot(z_ref[...], w_ref[...],
                            preferred_element_type=jnp.float32)

    @pl.when(k == pl.num_programs(2) - 1)
    def _():
        o_ref[...] = (acc_ref[...] + b_ref[...].astype(jnp.float32)
                      ).astype(o_ref.dtype)


# ----------------------------- wrapper ----------------------------------------

def make_decoder(w, b, *, tm_max=256, tn_max=512, tk_max=512):
    """One-time layout prep + jitted forward for y = z @ w.T + b.

    w: (output_dim, latent_dim)  -- PyTorch nn.Linear weight layout
    b: (output_dim,)
    Returns forward(z) with z: (B, latent_dim).
    """
    N, K = w.shape
    assert b.shape == (N,)

    # ---- hoisted parameter layout prep (runs once, not per forward call) ----
    Np = _round_up(N, 128)                     # lane axis -> multiple of 128
    k_tiled = K > _K_SPLIT
    Kp = _round_up(K, 128) if k_tiled else K   # pad K only when it gets tiled

    if (Kp, Np) == (K, N):
        w_t = jnp.asarray(w).T                                        # (K, N)
    else:
        w_t = jnp.zeros((Kp, Np), w.dtype).at[:K, :N].set(jnp.asarray(w).T)
    b2d = (jnp.asarray(b).reshape(1, N) if Np == N
           else jnp.zeros((1, Np), b.dtype).at[0, :N].set(b))

    tn = _pick_tile(Np, 128, tn_max)
    tk = _pick_tile(Kp, 128, tk_max) if k_tiled else Kp

    def forward(z):
        B, Kz = z.shape
        assert Kz == K

        # ---- minimal activation padding: B -> 8, K only when K-tiled -------
        Bp = _round_up(B, 8)
        if (Bp, Kp) != (B, K):
            z_p = jnp.zeros((Bp, Kp), z.dtype).at[:B, :K].set(z)
        else:
            z_p = z

        tm = _pick_tile(Bp, 8, tm_max)
        grid_m, grid_n = Bp // tm, Np // tn

        # v7x has 2 TensorCores: avoid a (1, 1) grid when N can be split.
        tn_eff = tn
        if grid_m == 1 and grid_n == 1 and Np >= 256 and (Np // 128) % 2 == 0:
            tn_eff = Np // 2
            grid_n = 2

        # Explicit scoped-VMEM budget from the double-buffered tile footprint.
        itemsize = jnp.dtype(z.dtype).itemsize
        k_blk = tk if k_tiled else Kp
        tile_bytes = (2 * (tm * k_blk + k_blk * tn_eff + tn_eff) * itemsize
                      + 2 * tm * tn_eff * itemsize
                      + (tm * tn_eff * 4 if k_tiled else 0))
        vmem_limit = int(min(max(int(tile_bytes * 1.5) + (2 << 20), 8 << 20),
                             48 << 20))
        cparams = pltpu.CompilerParams(
            dimension_semantics=(("parallel", "parallel", "arbitrary")
                                 if k_tiled else ("parallel", "parallel")),
            vmem_limit_bytes=vmem_limit,
        )

        if not k_tiled:
            # N outer / M inner: the weight block index depends only on the
            # outer axis, so each weight tile streams from HBM exactly once.
            y_p = pl.pallas_call(
                _linear_kernel,
                out_shape=jax.ShapeDtypeStruct((Bp, Np), z.dtype),
                grid=(grid_n, grid_m),
                in_specs=[
                    pl.BlockSpec((tm, Kp), lambda j, i: (i, 0)),       # acts
                    pl.BlockSpec((Kp, tn_eff), lambda j, i: (0, j)),   # weight
                    pl.BlockSpec((1, tn_eff), lambda j, i: (0, j)),    # bias
                ],
                out_specs=pl.BlockSpec((tm, tn_eff), lambda j, i: (i, j)),
                compiler_params=cparams,
            )(z_p, w_t, b2d)
        else:
            y_p = pl.pallas_call(
                _linear_kernel_ktiled,
                out_shape=jax.ShapeDtypeStruct((Bp, Np), z.dtype),
                grid=(grid_n, grid_m, Kp // tk),
                in_specs=[
                    pl.BlockSpec((tm, tk), lambda j, i, k: (i, k)),
                    pl.BlockSpec((tk, tn_eff), lambda j, i, k: (k, j)),
                    pl.BlockSpec((1, tn_eff), lambda j, i, k: (0, j)),
                ],
                out_specs=pl.BlockSpec((tm, tn_eff), lambda j, i, k: (i, j)),
                scratch_shapes=[pltpu.VMEM((tm, tn_eff), jnp.float32)],
                compiler_params=cparams,
            )(z_p, w_t, b2d)

        # Slice padded sublanes/lanes back off (no-op when already aligned).
        if (Bp, Np) == (B, N):
            return y_p
        return y_p[:B, :N]

    return jax.jit(forward)


if __name__ == "__main__":
    # Small shapes consistent with the module: Decoder(latent_dim=32, output_dim=64)
    batch, latent_dim, output_dim = 8, 32, 64

    key = jax.random.PRNGKey(0)
    k_z, k_w, k_b = jax.random.split(key, 3)

    # Deterministic init mimicking PyTorch Linear default
    # (uniform in [-1/sqrt(fan_in), 1/sqrt(fan_in)]).
    bound = 1.0 / (latent_dim ** 0.5)
    w = jax.random.uniform(k_w, (output_dim, latent_dim),
                           minval=-bound, maxval=bound, dtype=jnp.float32)
    b = jax.random.uniform(k_b, (output_dim,),
                           minval=-bound, maxval=bound, dtype=jnp.float32)
    z = jax.random.normal(k_z, (batch, latent_dim), dtype=jnp.float32)

    decoder = make_decoder(w, b)
    y = jax.block_until_ready(decoder(z))

    y_ref = z @ w.T + b
    assert y.shape == (batch, output_dim)
    assert jnp.allclose(y, y_ref, atol=1e-5, rtol=1e-5)

    # Second (still small) check exercising unaligned B/N padding paths.
    b2_, l2_, o2_ = 10, 48, 200
    k_z2, k_w2, k_b2 = jax.random.split(jax.random.PRNGKey(1), 3)
    bound2 = 1.0 / (l2_ ** 0.5)
    w2 = jax.random.uniform(k_w2, (o2_, l2_), minval=-bound2, maxval=bound2,
                            dtype=jnp.float32)
    bb2 = jax.random.uniform(k_b2, (o2_,), minval=-bound2, maxval=bound2,
                             dtype=jnp.float32)
    z2 = jax.random.normal(k_z2, (b2_, l2_), dtype=jnp.float32)
    y2 = jax.block_until_ready(make_decoder(w2, bb2)(z2))
    assert y2.shape == (b2_, o2_)
    assert jnp.allclose(y2, z2 @ w2.T + bb2, atol=1e-5, rtol=1e-5)

    print("KERNEL_OK")
</pallas_src>

<mosaic_0001>
module attributes {stable_mosaic.version = 11 : i64} {
  func.func @_linear_kernel(%arg0: i32, %arg1: i32, %arg2: memref<8x32xf32, #tpu.memory_space<vmem>>, %arg3: memref<32x128xf32, #tpu.memory_space<vmem>>, %arg4: memref<1x128xf32, #tpu.memory_space<vmem>>, %arg5: memref<8x128xf32, #tpu.memory_space<vmem>>) attributes {dimension_semantics = [#tpu.dimension_semantics<parallel>, #tpu.dimension_semantics<parallel>], iteration_bounds = array<i64: 1, 1>, scalar_prefetch = 0 : i64, scratch_operands = 0 : i64, tpu.core_type = #tpu.core_type<tc>, window_params = [{transform_indices = @transform_0, window_bounds = array<i64: 8, 32>}, {transform_indices = @transform_1, window_bounds = array<i64: 32, 128>}, {transform_indices = @transform_2, window_bounds = array<i64: 1, 128>}, {transform_indices = @transform_3, window_bounds = array<i64: 8, 128>}]} {
    %c0 = arith.constant 0 : index
    %c0_0 = arith.constant 0 : index
    %0 = vector.load %arg2[%c0, %c0_0] : memref<8x32xf32, #tpu.memory_space<vmem>>, vector<8x32xf32>
    %c0_1 = arith.constant 0 : index
    %c0_2 = arith.constant 0 : index
    %1 = vector.load %arg3[%c0_1, %c0_2] : memref<32x128xf32, #tpu.memory_space<vmem>>, vector<32x128xf32>
    %cst = arith.constant dense<0.000000e+00> : vector<8x128xf32>
    %2 = tpu.matmul %0, %1, %cst {dimension_numbers = #tpu.dot_dimension_numbers<[1], [0], [0], [1], [0, 0, 1, 1], [], []>} : vector<8x32xf32>, vector<32x128xf32>, vector<8x128xf32> -> vector<8x128xf32>
    %c0_3 = arith.constant 0 : index
    %c0_4 = arith.constant 0 : index
    %3 = vector.load %arg4[%c0_3, %c0_4] : memref<1x128xf32, #tpu.memory_space<vmem>>, vector<1x128xf32>
    %4 = vector.broadcast %3 : vector<1x128xf32> to vector<8x128xf32>
    %5 = arith.addf %2, %4 : vector<8x128xf32>
    %c0_5 = arith.constant 0 : index
    %c0_6 = arith.constant 0 : index
    %6 = vector.load %arg5[%c0_5, %c0_6] : memref<8x128xf32, #tpu.memory_space<vmem>>, vector<8x128xf32>
    tpu.vector_store %arg5[%c0_5, %c0_6], %5 {strides = array<i32>} : memref<8x128xf32, #tpu.memory_space<vmem>>, vector<8x128xf32>,
    return
  }
  func.func @transform_0(%arg0: i32, %arg1: i32) -> (i32, i32) {
    %c0_i32 = arith.constant 0 : i32
    %c0_i32_0 = arith.constant 0 : i32
    return %arg1, %c0_i32 : i32, i32
  }
  func.func @transform_1(%arg0: i32, %arg1: i32) -> (i32, i32) {
    %c0_i32 = arith.constant 0 : i32
    %c0_i32_0 = arith.constant 0 : i32
    return %c0_i32, %arg0 : i32, i32
  }
  func.func @transform_2(%arg0: i32, %arg1: i32) -> (i32, i32) {
    %c0_i32 = arith.constant 0 : i32
    %c0_i32_0 = arith.constant 0 : i32
    return %c0_i32, %arg0 : i32, i32
  }
  func.func @transform_3(%arg0: i32, %arg1: i32) -> (i32, i32) {
    %c0_i32 = arith.constant 0 : i32
    return %arg1, %arg0 : i32, i32
  }
}

</mosaic_0001>

<bundles_post_ra>
// kernel: forward.1
= control target key start
LH: loop header
LB: loop body
LE: loop exit
PB: predicated region body
PF: predicated region fallthrough
CT: control target
= control target key end

     0   :  { %8 = vsyncpa [#allocation3], 0  ;;  %s322_s0 = inlined_call_operand.hbm [shape: f32[8,32], index: 0, kind: input, shape index: {}]   ;;  %s323_s1 = inlined_call_operand.hbm [shape: f32[32,128], index: 1, kind: input, shape index: {}]   ;;  %s324_s2 = inlined_call_operand.vmem [shape: f32[1,128], index: 2, kind: input, shape index: {}]   ;;  %s325_s3 = inlined_call_operand.hbm [shape: f32[8,128], index: 3, kind: output, shape index: {}]  }
   0x1   :  { %9 = vsyncpa [#allocation6], 0 }
   0x2   :  { %10 = vsyncpa [#allocation4], 0  ;;  %s248_s12 = smov [#allocation2]   ;;  %s249_s14 = smov [#allocation5]  }
   0x3   :  { %s17_s13 = sshll.u32 %s248_s12, 4  ;;  %s26_s15 = sshll.u32 %s249_s14, 4  ;;  %s18_s13 = int_to_ptr.vmem [resolvable:$true] %s17_s13  ;;  %s276_s15 = int_to_ptr.vmem [resolvable:$true] %s26_s15 }
   0x4   :  { %s176_s18 = scalar_lea.hbm %s322_s0, 128 }
   0x5   :  { %p177_p0 = scmp.ne.s32.totalorder %s322_s0, %s176_s18  ;;  %p180_p1 = scmp.lt.u32.totalorder %s176_s18, %s322_s0 }
   0x7   :  { %p182_p2 = pnand %p180_p1, %p177_p0 }
   0x9   :  { %185 = shalt.err (!%p182_p2)
}
   0xa   :  { %s186_s23 = scalar_lea.vmem %s18_s13, 128  ;;  %p191_p4 = scmp.lt.s32.totalorder %s18_s13, %s18_s13 }
   0xb   :  { %p187_p3 = scmp.ne.s32.totalorder %s18_s13, %s186_s23  ;;  %p192_p5 = scmp.lt.s32.totalorder %s186_s23, %s186_s23 }
   0xd   :  { %p193_p6 = por %p192_p5, %p191_p4 }
   0xf   :  { %p194_p7 = pnand %p193_p6, %p187_p3 }
  0x11   :  { %197 = shalt.err (!%p194_p7)
}
  0x12   :  { %20 = dma.hbm_to_vmem [thread:$0]  %s322_s0, 128, %s18_s13, [#allocation3]  }
  0x13   :  { %s198_s28 = scalar_lea.hbm %s323_s1, 512 }
  0x14   :  { %p199_p8 = scmp.ne.s32.totalorder %s323_s1, %s198_s28  ;;  %p202_p9 = scmp.lt.u32.totalorder %s198_s28, %s323_s1 }
  0x16   :  { %p204_p10 = pnand %p202_p9, %p199_p8 }
  0x18   :  { %207 = shalt.err (!%p204_p10)
}
  0x19   :  { %s208_s6 = scalar_lea.vmem %s276_s15, 512  ;;  %p213_p12 = scmp.lt.s32.totalorder %s276_s15, %s276_s15 }
  0x1a   :  { %p209_p11 = scmp.ne.s32.totalorder %s276_s15, %s208_s6  ;;  %p214_p13 = scmp.lt.s32.totalorder %s208_s6, %s208_s6 }
  0x1c   :  { %p215_p0 = por %p214_p13, %p213_p12 }
  0x1e   :  { %p216_p1 = pnand %p215_p0, %p209_p11 }
  0x20   :  { %219 = shalt.err (!%p216_p1)
}
  0x21   :  { %s250_s0 = smov 128   ;;  %s251_s7 = smov 8  }
  0x22   :  { %32 = dma.hbm_to_vmem [thread:$0]  %s323_s1, 512, %s276_s15, [#allocation6], %s250_s0, %s250_s0, %s251_s7  }
  0x23   :  { %242 = dma.done.wait [#allocation3], 128  }
  0x24   :  { %243 = vsyncadd [#allocation3], 4294967168 }
  0x25   :  { %244 = dma.done.wait [#allocation6], 512  }
  0x26   :  { %245 = vsyncadd [#allocation6], 4294966784  ;;  %v252_v0 = vmov 0.0|0.0   ;;  %vm253_vm0 = vmmov 0   ;;  %v254_v1 = vmov 0.0   ;;  %v42_v2 = vld [vmem:[#allocation5] sm:$0xff] }
  0x27   :  { %162 = vmatprep.subr.bf16.mxu0 %v252_v0  ;;  %159 = vmatprep.mubr.msk.f32.mxu0 %vm253_vm0, %v254_v1  ;;  %v43_v3 = vld [vmem:[#allocation5 + $0x8] sm:$0xff]  ;;  %v44_v4 = vld [vmem:[#allocation5 + $0x10] sm:$0xff]  ;;  %v45_v6 = vld [vmem:[#allocation5 + $0x18] sm:$0xff]  ;;  %vm53_vm1 = vcmask 261120   ;;  %s255_s11 = smov [#allocation7]  }
  0x28   :  { %v163_v5 = vpack.c.bf16 %v43_v3, %v42_v2  ;;  %v166_v7 = vpack.c.bf16 %v45_v6, %v44_v4  ;;  %v41_v8 = vld [vmem:[#allocation2] sm:$0xff]  ;;  %s134_s12 = sshll.u32 %s255_s11, 4  ;;  %s135_s12 = int_to_ptr.vmem [resolvable:$true] %s134_s12 }
  0x29   :  { %v144_v9 = vld [vmem:[%s324_s2] ss:$0 sm:$0xff]  ;;  %s220_s13 = scalar_lea.vmem %s135_s12, 128  ;;  %p225_p3 = scmp.lt.s32.totalorder %s135_s12, %s135_s12 }
  0x2a   :  { %164 = vmatpush3.bf16.msra.mxu0 %v163_v5  ;;  %p221_p2 = scmp.ne.s32.totalorder %s135_s12, %s220_s13  ;;  %p226_p4 = scmp.lt.s32.totalorder %s220_s13, %s220_s13 }
  0x2b   :  { %165 = vmatprep.subr.bf16.mxu0 %v252_v0 }
  0x2c   :  { %p227_p5 = por %p226_p4, %p225_p3 }
  0x2e   :  { %167 = vmatpush3.bf16.msra.mxu0 %v166_v7  ;;  %p228_p6 = pnand %p227_p5, %p221_p2 }
  0x31   :  { %160 = vmatmul.mubr.msk.f32.vlgmr.msra.gmra.mrb[0].mxu0 %vm53_vm1, %v41_v8 }
 0x104   :  { %v123_v10 = vpop.f32.mrb[0].mxu0 }
 0x105   :  { %v124_v11 = vadd.f32 %v144_v9, %v123_v10  ;;  %v161_v12 = vpop.f32.mrb[1].mxu0 }
 0x107   :  { %127 = vst [vmem:[#allocation7] sm:$0xff] %v124_v11 }
 0x108   :  { %231 = shalt.err (!%p228_p6)
}
 0x109   :  { %s232_s16 = scalar_lea.hbm %s325_s3, 128 }
 0x10a   :  { %p233_p7 = scmp.ne.s32.totalorder %s325_s3, %s232_s16  ;;  %p236_p8 = scmp.lt.u32.totalorder %s232_s16, %s325_s3 }
 0x10c   :  { %p238_p9 = pnand %p236_p8, %p233_p7 }
 0x10e   :  { %241 = shalt.err (!%p238_p9)
}
 0x10f   :  { %137 = dma.vmem_to_hbm [thread:$0]  %s135_s12, 128, %s325_s3, [#allocation4]  }
 0x110   :  { %246 = dma.done.wait [#allocation4], 128  }
 0x111   :  { %247 = vsyncadd [#allocation4], 4294967168 }
 0x112   :  { %141 = vsyncpa [#allocation3], 1 }
 0x113   :  { %142 = vsyncpa [#allocation6], 1 }
 0x114   :  { %143 = vsyncpa [#allocation4], 1 }

</bundles_post_ra>
